<compile_context>
chip_gen: v5e
topology: v5e:2x2
jax: 0.10.0
libtpu: 0.0.40
codegen_flags: <defaults>
</compile_context>

<pallas_src>
import functools

import numpy as np

import jax
import jax.numpy as jnp
from jax.experimental import pallas as pl
from jax.experimental.pallas import tpu as pltpu


def _round_up(x, m):
    return (x + m - 1) // m * m


# ---------------------------------------------------------------------------
# complex <-> real channel packing (matches the PyTorch helpers)
# ---------------------------------------------------------------------------
def complex_to_real(x):
    return jnp.concatenate([jnp.real(x), jnp.imag(x)], axis=1).astype(jnp.float32)


def real_to_complex(x):
    # The PyTorch real_to_complex hard-splits into [1, 1] channels.
    assert x.shape[1] == 2, "real_to_complex expects exactly 2 channels (output_channels must be 1)"
    re = x[:, 0:1]
    im = x[:, 1:2]
    return (re + 1j * im).astype(jnp.complex64)


# ---------------------------------------------------------------------------
# Kernel: all layers fused, one image per grid step
# ---------------------------------------------------------------------------
def _fused_dwblock_kernel(x_ref, band_ref, bias_ref, o_ref, buf0, buf1, *,
                          H, lanes, num_layers):
    # x_ref   : (1, H, lanes)          one image, lane-dense (lanes >= W * Cmax)
    # band_ref: (L, 3, lanes, lanes)   banded per-(layer, dy) weight slabs
    # bias_ref: (L, 1, lanes)          bias tiled over x, padded channels = 0
    # o_ref   : (1, H, lanes)          last-layer output (lane-dense)
    # buf0/1  : (H+2, lanes) VMEM      zero-haloed ping-pong activation buffers
    bufs = (buf0, buf1)

    # In-kernel zero padding: halo rows (vertical) must be zero; horizontal
    # padding is encoded as zero rows/cols in the banded weight slabs.  These
    # are re-zeroed every step on purpose: scratch is per-core, so a
    # first-step-only init would be wrong under megacore grid sharding.
    zrow = jnp.zeros((1, lanes), jnp.float32)
    n_src_bufs = min(num_layers, 2)
    for buf in bufs[:n_src_bufs]:
        buf[pl.ds(0, 1), :] = zrow
        buf[pl.ds(H + 1, 1), :] = zrow

    # Image -> interior of buffer 0.
    buf0[pl.ds(1, H), :] = x_ref[0]

    for l in range(num_layers):
        src = bufs[l % 2]
        # 3 lane-dense MXU matmuls per layer: (H, lanes) @ (lanes, lanes).
        acc = jnp.dot(src[pl.ds(0, H), :], band_ref[l, 0],
                      preferred_element_type=jnp.float32)
        acc += jnp.dot(src[pl.ds(1, H), :], band_ref[l, 1],
                       preferred_element_type=jnp.float32)
        acc += jnp.dot(src[pl.ds(2, H), :], band_ref[l, 2],
                       preferred_element_type=jnp.float32)
        acc += bias_ref[l]                      # (1, lanes) sublane broadcast
        if l < num_layers - 1:
            bufs[(l + 1) % 2][pl.ds(1, H), :] = jnp.maximum(acc, 0.0)
        else:
            o_ref[0] = acc                      # last layer: no ReLU


def dwblock_pallas(x_lane, band, bias, *, H, lanes, num_layers):
    N = x_lane.shape[0]
    L = num_layers
    kernel = functools.partial(_fused_dwblock_kernel, H=H, lanes=lanes,
                               num_layers=L)
    flops = 2 * N * L * 3 * H * lanes * lanes
    bytes_accessed = int((x_lane.size + N * H * lanes + band.size + bias.size) * 4)
    return pl.pallas_call(
        kernel,
        out_shape=jax.ShapeDtypeStruct((N, H, lanes), jnp.float32),
        grid=(N,),
        in_specs=[
            pl.BlockSpec((1, H, lanes), lambda n: (n, 0, 0)),
            # Constant index_map: fetched once, stays VMEM-resident.
            pl.BlockSpec((L, 3, lanes, lanes), lambda n: (0, 0, 0, 0)),
            pl.BlockSpec((L, 1, lanes), lambda n: (0, 0, 0)),
        ],
        out_specs=pl.BlockSpec((1, H, lanes), lambda n: (n, 0, 0)),
        scratch_shapes=[pltpu.VMEM((H + 2, lanes), jnp.float32),
                        pltpu.VMEM((H + 2, lanes), jnp.float32)],
        compiler_params=pltpu.CompilerParams(
            dimension_semantics=("parallel",)),
        cost_estimate=pl.CostEstimate(flops=flops, transcendentals=0,
                                      bytes_accessed=bytes_accessed),
    )(x_lane, band, bias)


# ---------------------------------------------------------------------------
# Host-side weight packing: HWIO conv weights -> banded lane-dense slabs
# ---------------------------------------------------------------------------
def _build_band_and_bias(params, W, Cmax, lanes):
    """B[l, dy, xs*Cmax + c, xo*Cmax + co] = w_l[dy, xo-xs+1, c, co] (band |xo-xs|<=1)."""
    L = len(params)
    band = np.zeros((L, 3, lanes, lanes), np.float32)
    bias = np.zeros((L, 1, lanes), np.float32)
    for l, (w, b) in enumerate(params):
        wnp = np.asarray(w)            # (3, 3, cin, cout) HWIO
        bnp = np.asarray(b)            # (cout,)
        cin, cout = wnp.shape[2], wnp.shape[3]
        for dy in range(3):
            for dx in range(3):
                for xo in range(W):            # output column
                    xs = xo + dx - 1           # source column; out-of-range
                    if 0 <= xs < W:            # columns stay zero (h-padding)
                        band[l, dy,
                             xs * Cmax:xs * Cmax + cin,
                             xo * Cmax:xo * Cmax + cout] = wnp[dy, dx]
        brow = np.zeros((W, Cmax), np.float32)
        brow[:, :cout] = bnp[None, :]
        bias[l, 0, :W * Cmax] = brow.reshape(-1)
    return jnp.asarray(band), jnp.asarray(bias)


def init_dwblock_params(key, input_channels, features, output_channels,
                        number_of_layers):
    """Deterministic synthetic weights (HWIO: (3, 3, Cin, Cout)) and biases."""
    chans = ([input_channels * 2]
             + [features] * (number_of_layers - 1)
             + [output_channels * 2])
    params = []
    for i in range(number_of_layers):
        cin, cout = chans[i], chans[i + 1]
        key, kw, kb = jax.random.split(key, 3)
        fan_in = cin * 9
        w = jax.random.normal(kw, (3, 3, cin, cout), jnp.float32) / jnp.sqrt(fan_in)
        b = jax.random.normal(kb, (cout,), jnp.float32) * 0.01
        params.append((w, b))
    return params


class DWBlockPallas:
    """Fused Pallas implementation of dwblock.forward (default sn=False path)."""
    # TODO(synk): spectral_norm=True path (chen.spectral_norm) not implemented.

    def __init__(self, params, H, W):
        chans = [params[0][0].shape[2]] + [w.shape[3] for (w, _) in params]
        self.cmax = _round_up(max(chans), 8)
        self.H, self.W = H, W
        self.packed = W * self.cmax                       # used lanes
        self.lanes = _round_up(self.packed, 128)          # lane-dense width
        self.num_layers = len(params)
        self.cin0 = params[0][0].shape[2]
        self.cout_last = params[-1][0].shape[3]
        self.band, self.bias = _build_band_and_bias(params, W, self.cmax,
                                                    self.lanes)

    def __call__(self, x_c):
        N, _, H, W = x_c.shape
        assert (H, W) == (self.H, self.W)
        xr = complex_to_real(x_c)                              # (N, 2*Cin, H, W)
        assert xr.shape[1] == self.cin0
        # Pad channels up to Cmax once (tiny), go lane-dense (N, H, W*Cmax),
        # then pad lanes up to a multiple of 128.
        xp = jnp.pad(xr, ((0, 0), (0, self.cmax - self.cin0), (0, 0), (0, 0)))
        x_lane = jnp.transpose(xp, (0, 2, 3, 1)).reshape(N, H, self.packed)
        if self.lanes > self.packed:
            x_lane = jnp.pad(x_lane, ((0, 0), (0, 0),
                                      (0, self.lanes - self.packed)))
        out = dwblock_pallas(x_lane, self.band, self.bias, H=H,
                             lanes=self.lanes, num_layers=self.num_layers)
        out = out[..., :self.packed].reshape(N, H, W, self.cmax)
        out = out[..., :self.cout_last]
        out = jnp.transpose(out, (0, 3, 1, 2))                 # NCHW
        return real_to_complex(out)


# ---------------------------------------------------------------------------
# Pure-JAX reference (for correctness verification)
# ---------------------------------------------------------------------------
def dwblock_reference(x_c, params):
    h = complex_to_real(x_c)
    L = len(params)
    for i, (w, b) in enumerate(params):
        h = jax.lax.conv_general_dilated(
            h, w, window_strides=(1, 1), padding=((1, 1), (1, 1)),
            dimension_numbers=("NCHW", "HWIO", "NCHW"))
        h = h + b.reshape(1, -1, 1, 1)
        if i < L - 1:
            h = jnp.maximum(h, 0.0)
    return real_to_complex(h)


if __name__ == "__main__":
    # dwblock(input_channels=1, features=8, output_channels=1, number_of_layers=3)
    input_channels, features, output_channels, num_layers = 1, 8, 1, 3
    N, H, W = 2, 16, 16

    key = jax.random.PRNGKey(0)
    k_re, k_im, k_par = jax.random.split(key, 3)
    x = (jax.random.normal(k_re, (N, input_channels, H, W), jnp.float32)
         + 1j * jax.random.normal(k_im, (N, input_channels, H, W), jnp.float32)
         ).astype(jnp.complex64)
    params = init_dwblock_params(k_par, input_channels, features,
                                 output_channels, num_layers)

    model = DWBlockPallas(params, H, W)
    fwd = jax.jit(model.__call__)
    out = fwd(x)
    jax.block_until_ready(out)

    assert out.shape == (N, output_channels, H, W)
    assert out.dtype == jnp.complex64

    # Correctness check against XLA's conv (tolerance covers MXU f32 passes).
    ref = dwblock_reference(x, params)
    np.testing.assert_allclose(np.asarray(out), np.asarray(ref),
                               rtol=5e-2, atol=5e-2)

    print("KERNEL_OK")
</pallas_src>

<mosaic_0001>
module attributes {stable_mosaic.version = 11 : i64} {
  func.func @_fused_dwblock_kernel(%arg0: i32, %arg1: memref<1x16x128xf32, #tpu.memory_space<vmem>>, %arg2: memref<3x3x128x128xf32, #tpu.memory_space<vmem>>, %arg3: memref<3x1x128xf32, #tpu.memory_space<vmem>>, %arg4: memref<1x16x128xf32, #tpu.memory_space<vmem>>, %arg5: memref<18x128xf32, #tpu.memory_space<vmem>>, %arg6: memref<18x128xf32, #tpu.memory_space<vmem>>) attributes {dimension_semantics = [#tpu.dimension_semantics<parallel>], iteration_bounds = array<i64: 2>, scalar_prefetch = 0 : i64, scratch_operands = 2 : i64, tpu.core_type = #tpu.core_type<tc>, window_params = [{transform_indices = @transform_0, window_bounds = array<i64: 1, 16, 128>}, {pipeline_mode = #tpu.pipeline_mode<synchronous>, transform_indices = @transform_1, window_bounds = array<i64: 3, 3, 128, 128>}, {pipeline_mode = #tpu.pipeline_mode<synchronous>, transform_indices = @transform_2, window_bounds = array<i64: 3, 1, 128>}, {transform_indices = @transform_3, window_bounds = array<i64: 1, 16, 128>}]} {
    %cst = arith.constant 0.000000e+00 : f32
    %0 = vector.broadcast %cst : f32 to vector<1x128xf32>
    %c0 = arith.constant 0 : index
    %c0_0 = arith.constant 0 : index
    %1 = vector.load %arg5[%c0, %c0_0] : memref<18x128xf32, #tpu.memory_space<vmem>>, vector<1x128xf32>
    tpu.vector_store %arg5[%c0, %c0_0], %0 {strides = array<i32>} : memref<18x128xf32, #tpu.memory_space<vmem>>, vector<1x128xf32>,
    %c17 = arith.constant 17 : index
    %c0_1 = arith.constant 0 : index
    %2 = vector.load %arg5[%c17, %c0_1] : memref<18x128xf32, #tpu.memory_space<vmem>>, vector<1x128xf32>
    tpu.vector_store %arg5[%c17, %c0_1], %0 {strides = array<i32>} : memref<18x128xf32, #tpu.memory_space<vmem>>, vector<1x128xf32>,
    %c0_2 = arith.constant 0 : index
    %c0_3 = arith.constant 0 : index
    %3 = vector.load %arg6[%c0_2, %c0_3] : memref<18x128xf32, #tpu.memory_space<vmem>>, vector<1x128xf32>
    tpu.vector_store %arg6[%c0_2, %c0_3], %0 {strides = array<i32>} : memref<18x128xf32, #tpu.memory_space<vmem>>, vector<1x128xf32>,
    %c17_4 = arith.constant 17 : index
    %c0_5 = arith.constant 0 : index
    %4 = vector.load %arg6[%c17_4, %c0_5] : memref<18x128xf32, #tpu.memory_space<vmem>>, vector<1x128xf32>
    tpu.vector_store %arg6[%c17_4, %c0_5], %0 {strides = array<i32>} : memref<18x128xf32, #tpu.memory_space<vmem>>, vector<1x128xf32>,
    %c0_6 = arith.constant 0 : index
    %c0_7 = arith.constant 0 : index
    %c0_8 = arith.constant 0 : index
    %5 = vector.load %arg1[%c0_6, %c0_7, %c0_8] : memref<1x16x128xf32, #tpu.memory_space<vmem>>, vector<1x16x128xf32>
    %6 = vector.shape_cast %5 : vector<1x16x128xf32> to vector<16x128xf32>
    %c1 = arith.constant 1 : index
    %c0_9 = arith.constant 0 : index
    %7 = vector.load %arg5[%c1, %c0_9] : memref<18x128xf32, #tpu.memory_space<vmem>>, vector<16x128xf32>
    tpu.vector_store %arg5[%c1, %c0_9], %6 {strides = array<i32>} : memref<18x128xf32, #tpu.memory_space<vmem>>, vector<16x128xf32>,
    %c0_10 = arith.constant 0 : index
    %c0_11 = arith.constant 0 : index
    %8 = vector.load %arg5[%c0_10, %c0_11] : memref<18x128xf32, #tpu.memory_space<vmem>>, vector<16x128xf32>
    %c0_12 = arith.constant 0 : index
    %c0_13 = arith.constant 0 : index
    %c0_14 = arith.constant 0 : index
    %c0_15 = arith.constant 0 : index
    %9 = vector.load %arg2[%c0_12, %c0_13, %c0_14, %c0_15] : memref<3x3x128x128xf32, #tpu.memory_space<vmem>>, vector<1x1x128x128xf32>
    %10 = vector.shape_cast %9 : vector<1x1x128x128xf32> to vector<128x128xf32>
    %cst_16 = arith.constant dense<0.000000e+00> : vector<16x128xf32>
    %11 = tpu.matmul %8, %10, %cst_16 {dimension_numbers = #tpu.dot_dimension_numbers<[1], [0], [0], [1], [0, 0, 1, 1], [], []>} : vector<16x128xf32>, vector<128x128xf32>, vector<16x128xf32> -> vector<16x128xf32>
    %c1_17 = arith.constant 1 : index
    %c0_18 = arith.constant 0 : index
    %12 = vector.load %arg5[%c1_17, %c0_18] : memref<18x128xf32, #tpu.memory_space<vmem>>, vector<16x128xf32>
    %c0_19 = arith.constant 0 : index
    %c1_20 = arith.constant 1 : index
    %c0_21 = arith.constant 0 : index
    %c0_22 = arith.constant 0 : index
    %13 = vector.load %arg2[%c0_19, %c1_20, %c0_21, %c0_22] : memref<3x3x128x128xf32, #tpu.memory_space<vmem>>, vector<1x1x128x128xf32>
    %14 = vector.shape_cast %13 : vector<1x1x128x128xf32> to vector<128x128xf32>
    %cst_23 = arith.constant dense<0.000000e+00> : vector<16x128xf32>
    %15 = tpu.matmul %12, %14, %cst_23 {dimension_numbers = #tpu.dot_dimension_numbers<[1], [0], [0], [1], [0, 0, 1, 1], [], []>} : vector<16x128xf32>, vector<128x128xf32>, vector<16x128xf32> -> vector<16x128xf32>
    %16 = arith.addf %11, %15 : vector<16x128xf32>
    %c2 = arith.constant 2 : index
    %c0_24 = arith.constant 0 : index
    %17 = vector.load %arg5[%c2, %c0_24] : memref<18x128xf32, #tpu.memory_space<vmem>>, vector<16x128xf32>
    %c0_25 = arith.constant 0 : index
    %c2_26 = arith.constant 2 : index
    %c0_27 = arith.constant 0 : index
    %c0_28 = arith.constant 0 : index
    %18 = vector.load %arg2[%c0_25, %c2_26, %c0_27, %c0_28] : memref<3x3x128x128xf32, #tpu.memory_space<vmem>>, vector<1x1x128x128xf32>
    %19 = vector.shape_cast %18 : vector<1x1x128x128xf32> to vector<128x128xf32>
    %cst_29 = arith.constant dense<0.000000e+00> : vector<16x128xf32>
    %20 = tpu.matmul %17, %19, %cst_29 {dimension_numbers = #tpu.dot_dimension_numbers<[1], [0], [0], [1], [0, 0, 1, 1], [], []>} : vector<16x128xf32>, vector<128x128xf32>, vector<16x128xf32> -> vector<16x128xf32>
    %21 = arith.addf %16, %20 : vector<16x128xf32>
    %c0_30 = arith.constant 0 : index
    %c0_31 = arith.constant 0 : index
    %c0_32 = arith.constant 0 : index
    %22 = vector.load %arg3[%c0_30, %c0_31, %c0_32] : memref<3x1x128xf32, #tpu.memory_space<vmem>>, vector<1x1x128xf32>
    %23 = vector.shape_cast %22 : vector<1x1x128xf32> to vector<1x128xf32>
    %24 = vector.broadcast %23 : vector<1x128xf32> to vector<16x128xf32>
    %25 = arith.addf %21, %24 : vector<16x128xf32>
    %cst_33 = arith.constant 0.000000e+00 : f32
    %26 = vector.broadcast %cst_33 : f32 to vector<16x128xf32>
    %27 = arith.maximumf %25, %26 : vector<16x128xf32>
    %c1_34 = arith.constant 1 : index
    %c0_35 = arith.constant 0 : index
    %28 = vector.load %arg6[%c1_34, %c0_35] : memref<18x128xf32, #tpu.memory_space<vmem>>, vector<16x128xf32>
    tpu.vector_store %arg6[%c1_34, %c0_35], %27 {strides = array<i32>} : memref<18x128xf32, #tpu.memory_space<vmem>>, vector<16x128xf32>,
    %c0_36 = arith.constant 0 : index
    %c0_37 = arith.constant 0 : index
    %29 = vector.load %arg6[%c0_36, %c0_37] : memref<18x128xf32, #tpu.memory_space<vmem>>, vector<16x128xf32>
    %c1_38 = arith.constant 1 : index
    %c0_39 = arith.constant 0 : index
    %c0_40 = arith.constant 0 : index
    %c0_41 = arith.constant 0 : index
    %30 = vector.load %arg2[%c1_38, %c0_39, %c0_40, %c0_41] : memref<3x3x128x128xf32, #tpu.memory_space<vmem>>, vector<1x1x128x128xf32>
    %31 = vector.shape_cast %30 : vector<1x1x128x128xf32> to vector<128x128xf32>
    %cst_42 = arith.constant dense<0.000000e+00> : vector<16x128xf32>
    %32 = tpu.matmul %29, %31, %cst_42 {dimension_numbers = #tpu.dot_dimension_numbers<[1], [0], [0], [1], [0, 0, 1, 1], [], []>} : vector<16x128xf32>, vector<128x128xf32>, vector<16x128xf32> -> vector<16x128xf32>
    %c1_43 = arith.constant 1 : index
    %c0_44 = arith.constant 0 : index
    %33 = vector.load %arg6[%c1_43, %c0_44] : memref<18x128xf32, #tpu.memory_space<vmem>>, vector<16x128xf32>
    %c1_45 = arith.constant 1 : index
    %c1_46 = arith.constant 1 : index
    %c0_47 = arith.constant 0 : index
    %c0_48 = arith.constant 0 : index
    %34 = vector.load %arg2[%c1_45, %c1_46, %c0_47, %c0_48] : memref<3x3x128x128xf32, #tpu.memory_space<vmem>>, vector<1x1x128x128xf32>
    %35 = vector.shape_cast %34 : vector<1x1x128x128xf32> to vector<128x128xf32>
    %cst_49 = arith.constant dense<0.000000e+00> : vector<16x128xf32>
    %36 = tpu.matmul %33, %35, %cst_49 {dimension_numbers = #tpu.dot_dimension_numbers<[1], [0], [0], [1], [0, 0, 1, 1], [], []>} : vector<16x128xf32>, vector<128x128xf32>, vector<16x128xf32> -> vector<16x128xf32>
    %37 = arith.addf %32, %36 : vector<16x128xf32>
    %c2_50 = arith.constant 2 : index
    %c0_51 = arith.constant 0 : index
    %38 = vector.load %arg6[%c2_50, %c0_51] : memref<18x128xf32, #tpu.memory_space<vmem>>, vector<16x128xf32>
    %c1_52 = arith.constant 1 : index
    %c2_53 = arith.constant 2 : index
    %c0_54 = arith.constant 0 : index
    %c0_55 = arith.constant 0 : index
    %39 = vector.load %arg2[%c1_52, %c2_53, %c0_54, %c0_55] : memref<3x3x128x128xf32, #tpu.memory_space<vmem>>, vector<1x1x128x128xf32>
    %40 = vector.shape_cast %39 : vector<1x1x128x128xf32> to vector<128x128xf32>
    %cst_56 = arith.constant dense<0.000000e+00> : vector<16x128xf32>
    %41 = tpu.matmul %38, %40, %cst_56 {dimension_numbers = #tpu.dot_dimension_numbers<[1], [0], [0], [1], [0, 0, 1, 1], [], []>} : vector<16x128xf32>, vector<128x128xf32>, vector<16x128xf32> -> vector<16x128xf32>
    %42 = arith.addf %37, %41 : vector<16x128xf32>
    %c1_57 = arith.constant 1 : index
    %c0_58 = arith.constant 0 : index
    %c0_59 = arith.constant 0 : index
    %43 = vector.load %arg3[%c1_57, %c0_58, %c0_59] : memref<3x1x128xf32, #tpu.memory_space<vmem>>, vector<1x1x128xf32>
    %44 = vector.shape_cast %43 : vector<1x1x128xf32> to vector<1x128xf32>
    %45 = vector.broadcast %44 : vector<1x128xf32> to vector<16x128xf32>
    %46 = arith.addf %42, %45 : vector<16x128xf32>
    %cst_60 = arith.constant 0.000000e+00 : f32
    %47 = vector.broadcast %cst_60 : f32 to vector<16x128xf32>
    %48 = arith.maximumf %46, %47 : vector<16x128xf32>
    %c1_61 = arith.constant 1 : index
    %c0_62 = arith.constant 0 : index
    %49 = vector.load %arg5[%c1_61, %c0_62] : memref<18x128xf32, #tpu.memory_space<vmem>>, vector<16x128xf32>
    tpu.vector_store %arg5[%c1_61, %c0_62], %48 {strides = array<i32>} : memref<18x128xf32, #tpu.memory_space<vmem>>, vector<16x128xf32>,
    %c0_63 = arith.constant 0 : index
    %c0_64 = arith.constant 0 : index
    %50 = vector.load %arg5[%c0_63, %c0_64] : memref<18x128xf32, #tpu.memory_space<vmem>>, vector<16x128xf32>
    %c2_65 = arith.constant 2 : index
    %c0_66 = arith.constant 0 : index
    %c0_67 = arith.constant 0 : index
    %c0_68 = arith.constant 0 : index
    %51 = vector.load %arg2[%c2_65, %c0_66, %c0_67, %c0_68] : memref<3x3x128x128xf32, #tpu.memory_space<vmem>>, vector<1x1x128x128xf32>
    %52 = vector.shape_cast %51 : vector<1x1x128x128xf32> to vector<128x128xf32>
    %cst_69 = arith.constant dense<0.000000e+00> : vector<16x128xf32>
    %53 = tpu.matmul %50, %52, %cst_69 {dimension_numbers = #tpu.dot_dimension_numbers<[1], [0], [0], [1], [0, 0, 1, 1], [], []>} : vector<16x128xf32>, vector<128x128xf32>, vector<16x128xf32> -> vector<16x128xf32>
    %c1_70 = arith.constant 1 : index
    %c0_71 = arith.constant 0 : index
    %54 = vector.load %arg5[%c1_70, %c0_71] : memref<18x128xf32, #tpu.memory_space<vmem>>, vector<16x128xf32>
    %c2_72 = arith.constant 2 : index
    %c1_73 = arith.constant 1 : index
    %c0_74 = arith.constant 0 : index
    %c0_75 = arith.constant 0 : index
    %55 = vector.load %arg2[%c2_72, %c1_73, %c0_74, %c0_75] : memref<3x3x128x128xf32, #tpu.memory_space<vmem>>, vector<1x1x128x128xf32>
    %56 = vector.shape_cast %55 : vector<1x1x128x128xf32> to vector<128x128xf32>
    %cst_76 = arith.constant dense<0.000000e+00> : vector<16x128xf32>
    %57 = tpu.matmul %54, %56, %cst_76 {dimension_numbers = #tpu.dot_dimension_numbers<[1], [0], [0], [1], [0, 0, 1, 1], [], []>} : vector<16x128xf32>, vector<128x128xf32>, vector<16x128xf32> -> vector<16x128xf32>
    %58 = arith.addf %53, %57 : vector<16x128xf32>
    %c2_77 = arith.constant 2 : index
    %c0_78 = arith.constant 0 : index
    %59 = vector.load %arg5[%c2_77, %c0_78] : memref<18x128xf32, #tpu.memory_space<vmem>>, vector<16x128xf32>
    %c2_79 = arith.constant 2 : index
    %c2_80 = arith.constant 2 : index
    %c0_81 = arith.constant 0 : index
    %c0_82 = arith.constant 0 : index
    %60 = vector.load %arg2[%c2_79, %c2_80, %c0_81, %c0_82] : memref<3x3x128x128xf32, #tpu.memory_space<vmem>>, vector<1x1x128x128xf32>
    %61 = vector.shape_cast %60 : vector<1x1x128x128xf32> to vector<128x128xf32>
    %cst_83 = arith.constant dense<0.000000e+00> : vector<16x128xf32>
    %62 = tpu.matmul %59, %61, %cst_83 {dimension_numbers = #tpu.dot_dimension_numbers<[1], [0], [0], [1], [0, 0, 1, 1], [], []>} : vector<16x128xf32>, vector<128x128xf32>, vector<16x128xf32> -> vector<16x128xf32>
    %63 = arith.addf %58, %62 : vector<16x128xf32>
    %c2_84 = arith.constant 2 : index
    %c0_85 = arith.constant 0 : index
    %c0_86 = arith.constant 0 : index
    %64 = vector.load %arg3[%c2_84, %c0_85, %c0_86] : memref<3x1x128xf32, #tpu.memory_space<vmem>>, vector<1x1x128xf32>
    %65 = vector.shape_cast %64 : vector<1x1x128xf32> to vector<1x128xf32>
    %66 = vector.broadcast %65 : vector<1x128xf32> to vector<16x128xf32>
    %67 = arith.addf %63, %66 : vector<16x128xf32>
    %c0_87 = arith.constant 0 : index
    %c0_88 = arith.constant 0 : index
    %c0_89 = arith.constant 0 : index
    %68 = vector.load %arg4[%c0_87, %c0_88, %c0_89] : memref<1x16x128xf32, #tpu.memory_space<vmem>>, vector<1x16x128xf32>
    %69 = vector.shape_cast %68 : vector<1x16x128xf32> to vector<16x128xf32>
    %70 = vector.shape_cast %67 : vector<16x128xf32> to vector<1x16x128xf32>
    tpu.vector_store %arg4[%c0_87, %c0_88, %c0_89], %70 {strides = array<i32>} : memref<1x16x128xf32, #tpu.memory_space<vmem>>, vector<1x16x128xf32>,
    return
  }
  func.func @transform_0(%arg0: i32) -> (i32, i32, i32) {
    %c0_i32 = arith.constant 0 : i32
    %c0_i32_0 = arith.constant 0 : i32
    %c0_i32_1 = arith.constant 0 : i32
    return %arg0, %c0_i32, %c0_i32_0 : i32, i32, i32
  }
  func.func @transform_1(%arg0: i32) -> (i32, i32, i32, i32) {
    %c0_i32 = arith.constant 0 : i32
    %c0_i32_0 = arith.constant 0 : i32
    %c0_i32_1 = arith.constant 0 : i32
    %c0_i32_2 = arith.constant 0 : i32
    %c0_i32_3 = arith.constant 0 : i32
    return %c0_i32, %c0_i32_0, %c0_i32_1, %c0_i32_2 : i32, i32, i32, i32
  }
  func.func @transform_2(%arg0: i32) -> (i32, i32, i32) {
    %c0_i32 = arith.constant 0 : i32
    %c0_i32_0 = arith.constant 0 : i32
    %c0_i32_1 = arith.constant 0 : i32
    %c0_i32_2 = arith.constant 0 : i32
    return %c0_i32, %c0_i32_0, %c0_i32_1 : i32, i32, i32
  }
  func.func @transform_3(%arg0: i32) -> (i32, i32, i32) {
    %c0_i32 = arith.constant 0 : i32
    %c0_i32_0 = arith.constant 0 : i32
    %c0_i32_1 = arith.constant 0 : i32
    return %arg0, %c0_i32, %c0_i32_0 : i32, i32, i32
  }
}

</mosaic_0001>

<bundles_post_ra>
// kernel: custom-call.1
= control target key start
LH: loop header
LB: loop body
LE: loop exit
PB: predicated region body
PF: predicated region fallthrough
CT: control target
= control target key end

     0   :  { %s56_s0 = inlined_call_operand.hbm [shape: c64[2,1,16,16], index: 0, kind: input, shape index: {}]   ;;  %s57_s1 = inlined_call_operand.vmem [shape: f32[2,1,16,16], index: 1, kind: output, shape index: {}]  }
   0x1   :  { %s2_s8 = scalar_lea.hbm %s56_s0, 32 }
   0x2   :  { %3 = vsyncpa [#allocation0], 0  ;;  %s5_s9 = sshll.u32 %s2_s8, 4  ;;  %s7_s12 = sshll.u32 %s57_s1, 4  ;;  %s6_s9 = int_to_ptr.hbm [resolvable:$true] %s5_s9  ;;  %s8_s12 = int_to_ptr.vmem [resolvable:$true] %s7_s12 }
   0x3   :  { %10 = dma.hbm_to_vmem [thread:$0]  %s6_s9, 512, %s8_s12, [#allocation0] }
   0x4   :  { %38 = dma.done.wait [#allocation0], 512  }
   0x5   :  { %39 = vsyncadd [#allocation0], 4294966784 }
   0x6   :  { %13 = vsyncpa [#allocation0], 1 }

// kernel: custom-call
= control target key start
LH: loop header
LB: loop body
LE: loop exit
PB: predicated region body
PF: predicated region fallthrough
CT: control target
= control target key end

     0   :  { %2 = vsyncpa [#allocation0], 0  ;;  %s55_s0 = inlined_call_operand.hbm [shape: c64[2,1,16,16], index: 0, kind: input, shape index: {}]   ;;  %s56_s1 = inlined_call_operand.vmem [shape: f32[2,1,16,16], index: 1, kind: output, shape index: {}]  }
   0x1   :  { %s4_s8 = sshll.u32 %s55_s0, 4  ;;  %s6_s11 = sshll.u32 %s56_s1, 4  ;;  %s5_s8 = int_to_ptr.hbm [resolvable:$true] %s4_s8  ;;  %s7_s11 = int_to_ptr.vmem [resolvable:$true] %s6_s11 }
   0x2   :  { %9 = dma.hbm_to_vmem [thread:$0]  %s5_s8, 512, %s7_s11, [#allocation0] }
   0x3   :  { %37 = dma.done.wait [#allocation0], 512  }
   0x4   :  { %38 = vsyncadd [#allocation0], 4294966784 }
   0x5   :  { %12 = vsyncpa [#allocation0], 1 }

// kernel: custom-call.2
= control target key start
LH: loop header
LB: loop body
LE: loop exit
PB: predicated region body
PF: predicated region fallthrough
CT: control target
= control target key end

     0   :  { %s111_s0 = inlined_call_operand.vmem [shape: f32[2,1,16,16], index: 0, kind: input, shape index: {}]   ;;  %s112_s1 = inlined_call_operand.vmem [shape: f32[2,1,16,16], index: 1, kind: input, shape index: {}]   ;;  %s113_s2 = inlined_call_operand.vmem [shape: c64[2,1,16,16], index: 2, kind: output, shape index: {}]  }
   0x1   :  { %v4_v0 = vld [vmem:[%s111_s0] sm:$0xff]  ;;  %v35_v1 = vld [vmem:[%s111_s0 + $0x8] sm:$0xff]  ;;  %v37_v2 = vld [vmem:[%s111_s0 + $0x10] sm:$0xff] }
   0x2   :  { %5 = vst [vmem:[%s113_s2] sm:$0xff] %v4_v0  ;;  %v39_v3 = vld [vmem:[%s111_s0 + $0x18] sm:$0xff]  ;;  %v18_v4 = vld [vmem:[%s112_s1] sm:$0xff]  ;;  %v42_v5 = vld [vmem:[%s112_s1 + $0x8] sm:$0xff] }
   0x3   :  { %36 = vst [vmem:[%s113_s2 + $0x8] sm:$0xff] %v35_v1  ;;  %v44_v6 = vld [vmem:[%s112_s1 + $0x10] sm:$0xff]  ;;  %v46_v7 = vld [vmem:[%s112_s1 + $0x18] sm:$0xff] }
   0x4   :  { %38 = vst [vmem:[%s113_s2 + $0x10] sm:$0xff] %v37_v2 }
   0x5   :  { %40 = vst [vmem:[%s113_s2 + $0x18] sm:$0xff] %v39_v3 }
   0x6   :  { %41 = vst [vmem:[%s113_s2 + $0x20] sm:$0xff] %v18_v4 }
   0x7   :  { %43 = vst [vmem:[%s113_s2 + $0x28] sm:$0xff] %v42_v5 }
   0x8   :  { %45 = vst [vmem:[%s113_s2 + $0x30] sm:$0xff] %v44_v6 }
   0x9   :  { %47 = vst [vmem:[%s113_s2 + $0x38] sm:$0xff] %v46_v7 }

// kernel: a_call__.1
= control target key start
LH: loop header
LB: loop body
LE: loop exit
PB: predicated region body
PF: predicated region fallthrough
CT: control target
= control target key end

     0   :  { %8 = vsyncpa [#allocation5], 0  ;;  %s800_s12 = smov 0   ;;  %s851_s0 = inlined_call_operand.vmem [shape: f32[2,16,128], index: 0, kind: input, shape index: {}]   ;;  %s852_s1 = inlined_call_operand.hbm [shape: f32[3,3,128,128], index: 1, kind: input, shape index: {}]   ;;  %s853_s2 = inlined_call_operand.vmem [shape: f32[3,1,128], index: 2, kind: input, shape index: {}]   ;;  %s854_s3 = inlined_call_operand.vmem [shape: f32[2,16,128], index: 3, kind: output, shape index: {}]  }
   0x1 LB: > { %s124_s15 = sshll.u32 %s852_s1, 4  ;;  %s809_s16 = sadd.s32 4294967295, %s774_s12   ;;  %s774_s12 = sphi %s800_s12, %s14_s12   ;;  %s125_s15 = int_to_ptr.hbm [resolvable:$true] %s124_s15 }
   0x2   : > { %p678_p0 = scmp.ge.s32.totalorder %s774_s12, 1  ;;  %p113_p1 = scmp.lt.s32.totalorder %s774_s12, 3 }
   0x3   : > { %p717_p2 = scmp.eq.s32.totalorder %s809_s16, 0  ;;  %s776_s17 = smov [#allocation4]  }
   0x4   : > { %p114_p3 = pnand %p678_p0, %p113_p1  ;;  %s126_s18 = sshll.u32 %s776_s17, 4  ;;  %s127_s18 = int_to_ptr.vmem [resolvable:$true] %s126_s18 }
   0x5   : > { %s777_s19 = smov 128   ;;  %s778_s20 = smov 8  }
   0x6   : > { %p713_p4 = pneg %p114_p3  ;;  %153 = sbr.rel (%p114_p3) target bundleno = 486 (0x1e6), region = 32 }
   0x8   : > { %p714_p5 = pnand %p717_p2, %p713_p4 }
   0xa   : > { %716 = dma.hbm_to_vmem [thread:$0]  (!%p714_p5), %s125_s15, 18432, %s127_s18, [#allocation5], %s777_s19, %s777_s19, %s778_s20  }
   0xb   : > { %769 = dma.done.wait (%p717_p2), [#allocation5], 18432  }
   0xc   : > { %771 = vsyncadd (%p717_p2), [#allocation5], 4294948864  ;;  %v779_v0 = vmov 0.0   ;;  %v297_v1 = vld [vmem:[#allocation4 + $0x178] sm:$0xff]  ;;  %v296_v2 = vld [vmem:[#allocation4 + $0x170] sm:$0xff]  ;;  %p178_p6 = scmp.lt.s32.totalorder %s809_s16, 1 }
   0xd   : > { %188 = vst [vmem:[#allocation2] sm:$0x1] %v779_v0  ;;  %v232_v3 = vld [vmem:[#allocation4 + $0xf8] sm:$0xff]  ;;  %298 = vmatpush.msra.mxu2 %v297_v1  ;;  %v231_v5 = vld [vmem:[#allocation4 + $0xf0] sm:$0xff]  ;;  %v295_v6 = vld [vmem:[#allocation4 + $0x168] sm:$0xff] }
   0xe   : > { %189 = vst [vmem:[#allocation2 + $0x11] sm:$0x1] %v779_v0  ;;  %233 = vmatpush.msra.mxu0 %v232_v3  ;;  %v213_v4 = vld [vmem:[#allocation4 + $0x78] sm:$0xff]  ;;  %v212_v7 = vld [vmem:[#allocation4 + $0x70] sm:$0xff]  ;;  %v230_v8 = vld [vmem:[#allocation4 + $0xe8] sm:$0xff]  ;;  %s856_s16 = smov (!%p178_p6, %s809_s16), 1 }
   0xf   : > { %190 = vst [vmem:[#allocation3] sm:$0x1] %v779_v0  ;;  %256 = vmatpush.msra.mxu1 %v213_v4  ;;  %299 = vmatpush.msra.mxu2 %v296_v2  ;;  %v211_v9 = vld [vmem:[#allocation4 + $0x68] sm:$0xff]  ;;  %v294_v10 = vld [vmem:[#allocation4 + $0x160] sm:$0xff]  ;;  %v293_v13 = vld [vmem:[#allocation4 + $0x158] sm:$0xff]  ;;  %s691_s21 = sshll.u32 %s856_s16, 4 }
  0x10   : > { %191 = vst [vmem:[#allocation3 + $0x11] sm:$0x1] %v779_v0  ;;  %234 = vmatpush.msra.mxu0 %v231_v5  ;;  %v229_v11 = vld [vmem:[#allocation4 + $0xe0] sm:$0xff]  ;;  %v228_v14 = vld [vmem:[#allocation4 + $0xd8] sm:$0xff]  ;;  %v292_v16 = vld [vmem:[#allocation4 + $0x150] sm:$0xff]  ;;  %s182_s24 = scalar_lea.vmem %s851_s0, %s691_s21  ;;  %s187_s6 = scalar_lea.vmem %s854_s3, %s691_s21 }
  0x11   : > { %257 = vmatpush.msra.mxu1 %v212_v7  ;;  %300 = vmatpush.msra.mxu2 %v295_v6  ;;  %v210_v12 = vld [vmem:[#allocation4 + $0x60] sm:$0xff]  ;;  %v209_v15 = vld [vmem:[#allocation4 + $0x58] sm:$0xff]  ;;  %v227_v17 = vld [vmem:[#allocation4 + $0xd0] sm:$0xff] }
  0x12   : > { %235 = vmatpush.msra.mxu0 %v230_v8  ;;  %v208_v18 = vld [vmem:[#allocation4 + $0x50] sm:$0xff]  ;;  %v291_v19 = vld [vmem:[#allocation4 + $0x148] sm:$0xff]  ;;  %v290_v22 = vld [vmem:[#allocation4 + $0x140] sm:$0xff] }
  0x13   : > { %258 = vmatpush.msra.mxu1 %v211_v9  ;;  %301 = vmatpush.msra.mxu2 %v294_v10  ;;  %v226_v20 = vld [vmem:[#allocation4 + $0xc8] sm:$0xff]  ;;  %v225_v23 = vld [vmem:[#allocation4 + $0xc0] sm:$0xff]  ;;  %v289_v25 = vld [vmem:[#allocation4 + $0x138] sm:$0xff] }
  0x14   : > { %236 = vmatpush.msra.mxu0 %v229_v11  ;;  %v207_v21 = vld [vmem:[#allocation4 + $0x48] sm:$0xff]  ;;  %v206_v24 = vld [vmem:[#allocation4 + $0x40] sm:$0xff]  ;;  %v224_v26 = vld [vmem:[#allocation4 + $0xb8] sm:$0xff] }
  0x15   : > { %259 = vmatpush.msra.mxu1 %v210_v12  ;;  %302 = vmatpush.msra.mxu2 %v293_v13  ;;  %v826_v27 = vld [vmem:[%s182_s24] sm:$0xff]  ;;  %v205_v28 = vld [vmem:[#allocation4 + $0x38] sm:$0xff]  ;;  %v287_v35 = vld [vmem:[#allocation4 + $0x128] sm:$0xff] }
  0x16   : > { %237 = vmatpush.msra.mxu0 %v228_v14  ;;  %v828_v29 = vld [vmem:[%s182_s24 + $0x8] sm:$0xff]  ;;  %194 = vst [vmem:[#allocation2 + $0x1] sm:$0xff] %v826_v27  ;;  %v288_v30 = vld [vmem:[#allocation4 + $0x130] sm:$0xff]  ;;  %v222_v36 = vld [vmem:[#allocation4 + $0xa8] sm:$0xff] }
  0x17   : > { %260 = vmatpush.msra.mxu1 %v209_v15  ;;  %303 = vmatpush.msra.mxu2 %v292_v16  ;;  %v223_v31 = vld [vmem:[#allocation4 + $0xb0] sm:$0xff]  ;;  %195 = vst [vmem:[#allocation2 + $0x9] sm:$0xff] %v828_v29  ;;  %v370_v32 = vld [vmem:[#allocation4 + $0x278] sm:$0xff]  ;;  %v203_v37 = vld [vmem:[#allocation4 + $0x28] sm:$0xff] }
  0x18   : > { %238 = vmatpush.msra.mxu0 %v227_v17  ;;  %v204_v33 = vld [vmem:[#allocation4 + $0x30] sm:$0xff]  ;;  %371 = vmatpush.msra.mxu3 %v370_v32  ;;  %v368_v38 = vld [vmem:[#allocation4 + $0x268] sm:$0xff]  ;;  %v286_v39 = vld [vmem:[#allocation4 + $0x120] sm:$0xff] }
  0x19   : > { %261 = vmatpush.msra.mxu1 %v208_v18  ;;  %304 = vmatpush.msra.mxu2 %v291_v19  ;;  %v369_v34 = vld [vmem:[#allocation4 + $0x270] sm:$0xff]  ;;  %v221_v40 = vld [vmem:[#allocation4 + $0xa0] sm:$0xff]  ;;  %v285_v43 = vld [vmem:[#allocation4 + $0x118] sm:$0xff] }
  0x1a   : > { %239 = vmatpush.msra.mxu0 %v226_v20  ;;  %372 = vmatpush.msra.mxu3 %v369_v34  ;;  %v202_v41 = vld [vmem:[#allocation4 + $0x20] sm:$0xff]  ;;  %v220_v44 = vld [vmem:[#allocation4 + $0x98] sm:$0xff]  ;;  %v284_v45 = vld [vmem:[#allocation4 + $0x110] sm:$0xff] }
  0x1b   : > { %262 = vmatpush.msra.mxu1 %v207_v21  ;;  %305 = vmatpush.msra.mxu2 %v290_v22  ;;  %v367_v42 = vld [vmem:[#allocation4 + $0x260] sm:$0xff]  ;;  %v201_v46 = vld [vmem:[#allocation4 + $0x18] sm:$0xff]  ;;  %v219_v48 = vld [vmem:[#allocation4 + $0x90] sm:$0xff] }
  0x1c   : > { %240 = vmatpush.msra.mxu0 %v225_v23  ;;  %373 = vmatpush.msra.mxu3 %v368_v38  ;;  %v366_v47 = vld [vmem:[#allocation4 + $0x258] sm:$0xff]  ;;  %v200_v49 = vld [vmem:[#allocation4 + $0x10] sm:$0xff]  ;;  %v283_v51 = vld [vmem:[#allocation4 + $0x108] sm:$0xff] }
  0x1d   : > { %263 = vmatpush.msra.mxu1 %v206_v24  ;;  %306 = vmatpush.msra.mxu2 %v289_v25  ;;  %v365_v50 = vld [vmem:[#allocation4 + $0x250] sm:$0xff]  ;;  %v218_v52 = vld [vmem:[#allocation4 + $0x88] sm:$0xff]  ;;  %v282_v55 = vld [vmem:[#allocation4 + $0x100] sm:$0xff] }
  0x1e   : > { %241 = vmatpush.msra.mxu0 %v224_v26  ;;  %374 = vmatpush.msra.mxu3 %v367_v42  ;;  %v199_v53 = vld [vmem:[#allocation4 + $0x8] sm:$0xff]  ;;  %v217_v56 = vld [vmem:[#allocation4 + $0x80] sm:$0xff]  ;;  %v279_v57 = vld [vmem:[#allocation2 + $0x2] sm:$0xff] }
  0x1f   : > { %264 = vmatpush.msra.mxu1 %v205_v28  ;;  %307 = vmatpush.msra.mxu2 %v288_v30  ;;  %v364_v54 = vld [vmem:[#allocation4 + $0x248] sm:$0xff]  ;;  %v198_v58 = vld [vmem:[#allocation4] sm:$0xff]  ;;  %v196_v59 = vld [vmem:[#allocation2] sm:$0xff] }
  0x20   : > { %242 = vmatpush.msra.mxu0 %v223_v31  ;;  %375 = vmatpush.msra.mxu3 %v366_v47  ;;  %v351_v60 = vld [vmem:[#allocation4 + $0x1f8] sm:$0xff]  ;;  %v350_v62 = vld [vmem:[#allocation4 + $0x1f0] sm:$0xff]  ;;  %v349_v0 = vld [vmem:[#allocation4 + $0x1e8] sm:$0xff] }
  0x21   : > { %265 = vmatpush.msra.mxu1 %v204_v33  ;;  %308 = vmatpush.msra.mxu2 %v287_v35  ;;  %v435_v61 = vld [vmem:[#allocation4 + $0x2f8] sm:$0xff]  ;;  %v434_v63 = vld [vmem:[#allocation4 + $0x2f0] sm:$0xff]  ;;  %v433_v1 = vld [vmem:[#allocation4 + $0x2e8] sm:$0xff] }
  0x22   : > { %243 = vmatpush.msra.mxu0 %v222_v36  ;;  %376 = vmatpush.msra.mxu3 %v365_v50  ;;  %v280_v2 = vld [vmem:[#allocation2 + $0xa] sm:$0xff]  ;;  %v346_v6 = vld [vmem:[#allocation4 + $0x1d0] sm:$0xff]  ;;  %v345_v7 = vld [vmem:[#allocation4 + $0x1c8] sm:$0xff] }
  0x23   : > { %266 = vmatpush.msra.mxu1 %v203_v37  ;;  %309 = vmatpush.msra.mxu2 %v286_v39  ;;  %v348_v3 = vld [vmem:[#allocation4 + $0x1e0] sm:$0xff]  ;;  %v197_v4 = vld [vmem:[#allocation2 + $0x8] sm:$0xff]  ;;  %v361_v10 = vld [vmem:[#allocation4 + $0x230] sm:$0xff] }
  0x24   : > { %244 = vmatpush.msra.mxu0 %v221_v40  ;;  %377 = vmatpush.msra.mxu3 %v364_v54  ;;  %v347_v5 = vld [vmem:[#allocation4 + $0x1d8] sm:$0xff]  ;;  %v363_v8 = vld [vmem:[#allocation4 + $0x240] sm:$0xff]  ;;  %v360_v11 = vld [vmem:[#allocation4 + $0x228] sm:$0xff] }
  0x25   : > { %267 = vmatpush.msra.mxu1 %v202_v41  ;;  %310 = vmatpush.msra.mxu2 %v285_v43  ;;  %v362_v9 = vld [vmem:[#allocation4 + $0x238] sm:$0xff]  ;;  %v344_v12 = vld [vmem:[#allocation4 + $0x1c0] sm:$0xff]  ;;  %v342_v18 = vld [vmem:[#allocation4 + $0x1b0] sm:$0xff] }
  0x26   : > { %245 = vmatpush.msra.mxu0 %v220_v44  ;;  %378 = vmatpush.msra.mxu3 %v363_v8  ;;  %v432_v13 = vld [vmem:[#allocation4 + $0x2e0] sm:$0xff]  ;;  %v343_v15 = vld [vmem:[#allocation4 + $0x1b8] sm:$0xff]  ;;  %v430_v19 = vld [vmem:[#allocation4 + $0x2d0] sm:$0xff] }
  0x27   : > { %268 = vmatpush.msra.mxu1 %v201_v46  ;;  %311 = vmatpush.msra.mxu2 %v284_v45  ;;  %v359_v14 = vld [vmem:[#allocation4 + $0x220] sm:$0xff]  ;;  %v431_v16 = vld [vmem:[#allocation4 + $0x2d8] sm:$0xff]  ;;  %v357_v20 = vld [vmem:[#allocation4 + $0x210] sm:$0xff] }
  0x28   : > { %246 = vmatpush.msra.mxu0 %v219_v48  ;;  %379 = vmatpush.msra.mxu3 %v362_v9  ;;  %v358_v17 = vld [vmem:[#allocation4 + $0x218] sm:$0xff]  ;;  %v341_v21 = vld [vmem:[#allocation4 + $0x1a8] sm:$0xff]  ;;  %v340_v24 = vld [vmem:[#allocation4 + $0x1a0] sm:$0xff] }
  0x29   : > { %269 = vmatpush.msra.mxu1 %v200_v49  ;;  %312 = vmatpush.msra.mxu2 %v283_v51  ;;  %v429_v22 = vld [vmem:[#allocation4 + $0x2c8] sm:$0xff]  ;;  %v428_v25 = vld [vmem:[#allocation4 + $0x2c0] sm:$0xff]  ;;  %v427_v28 = vld [vmem:[#allocation4 + $0x2b8] sm:$0xff] }
  0x2a   : > { %247 = vmatpush.msra.mxu0 %v218_v52  ;;  %380 = vmatpush.msra.mxu3 %v361_v10  ;;  %v356_v23 = vld [vmem:[#allocation4 + $0x208] sm:$0xff]  ;;  %v355_v26 = vld [vmem:[#allocation4 + $0x200] sm:$0xff]  ;;  %v426_v30 = vld [vmem:[#allocation4 + $0x2b0] sm:$0xff] }
  0x2b   : > { %270 = vmatpush.msra.mxu1 %v199_v53  ;;  %313 = vmatpush.msra.mxu2 %v282_v55  ;;  %v337_v31 = vld [vmem:[#allocation4 + $0x188] sm:$0xff]  ;;  %v336_v33 = vld [vmem:[#allocation4 + $0x180] sm:$0xff]  ;;  %v423_v35 = vld [vmem:[#allocation4 + $0x298] sm:$0xff] }
  0x2c   : > { %248 = vmatpush.msra.mxu0 %v217_v56  ;;  %314 = vmatmul.f32.vlgmr.msra.gmra.mxu2 %v279_v57  ;;  %v425_v32 = vld [vmem:[#allocation4 + $0x2a8] sm:$0xff]  ;;  %v424_v34 = vld [vmem:[#allocation4 + $0x2a0] sm:$0xff]  ;;  %v422_v36 = vld [vmem:[#allocation4 + $0x290] sm:$0xff] }
  0x2d   : > { %271 = vmatpush.msra.mxu1 %v198_v58  ;;  %249 = vmatmul.f32.vlgmr.msra.gmra.mxu0 %v826_v27  ;;  %v339_v27 = vld [vmem:[#allocation4 + $0x198] sm:$0xff]  ;;  %v421_v37 = vld [vmem:[#allocation4 + $0x288] sm:$0xff]  ;;  %v420_v38 = vld [vmem:[#allocation4 + $0x280] sm:$0xff] }
  0x2e   : > { %272 = vmatmul.f32.vlgmr.msra.gmra.mxu1 %v196_v59  ;;  %394 = vmatpush.msrb.mxu0 %v351_v60  ;;  %v731_v42 = vld [vmem:[%s853_s2] ss:$0 sm:$0xff]  ;;  %v509_v43 = vld [vmem:[#allocation4 + $0x3f8] sm:$0xff]  ;;  %v507_v49 = vld [vmem:[#allocation4 + $0x3e8] sm:$0xff] }
  0x2f   : > { %436 = vmatpush.msrb.mxu1 %v435_v61  ;;  %381 = vmatpush.msra.mxu3 %v360_v11  ;;  %v490_v44 = vld [vmem:[#allocation4 + $0x378] sm:$0xff]  ;;  %v508_v45 = vld [vmem:[#allocation4 + $0x3f0] sm:$0xff]  ;;  %v488_v50 = vld [vmem:[#allocation4 + $0x368] sm:$0xff] }
  0x30   : > { %395 = vmatpush.msrb.mxu0 %v350_v62  ;;  %510 = vmatpush.msrb.mxu2 %v509_v43  ;;  %v489_v47 = vld [vmem:[#allocation4 + $0x370] sm:$0xff]  ;;  %v506_v54 = vld [vmem:[#allocation4 + $0x3e0] sm:$0xff]  ;;  %v501_v8 = vld [vmem:[#allocation4 + $0x3b8] sm:$0xff] }
  0x31   : > { %437 = vmatpush.msrb.mxu1 %v434_v63  ;;  %382 = vmatpush.msra.mxu3 %v359_v14  ;;  %v487_v55 = vld [vmem:[#allocation4 + $0x360] sm:$0xff]  ;;  %v485_v9 = vld [vmem:[#allocation4 + $0x350] sm:$0xff]  ;;  %v484_v11 = vld [vmem:[#allocation4 + $0x348] sm:$0xff] }
  0x32   : > { %396 = vmatpush.msrb.mxu0 %v349_v0  ;;  %511 = vmatpush.msrb.mxu2 %v508_v45  ;;  %v573_v10 = vld [vmem:[#allocation4 + $0x470] sm:$0xff]  ;;  %v483_v14 = vld [vmem:[#allocation4 + $0x340] sm:$0xff] }
  0x33   : > { %438 = vmatpush.msrb.mxu1 %v433_v1  ;;  %383 = vmatpush.msra.mxu3 %v358_v17  ;;  %v498_v17 = vld [vmem:[#allocation4 + $0x3a0] sm:$0xff]  ;;  %v732_v45 = vld [vmem:[%s853_s2 + $0x1] ss:$0 sm:$0xff] }
  0x34   : > { %317 = vmatmul.f32.gmra.mxu2 %v280_v2  ;;  %397 = vmatpush.msrb.mxu0 %v348_v3  ;;  %v505_v2 = vld [vmem:[#allocation4 + $0x3d8] sm:$0xff]  ;;  %v504_v3 = vld [vmem:[#allocation4 + $0x3d0] sm:$0xff] }
  0x35   : > { %252 = vmatmul.f32.gmra.mxu0 %v828_v29  ;;  %439 = vmatpush.msrb.mxu1 %v432_v13  ;;  %v338_v29 = vld [vmem:[#allocation4 + $0x190] sm:$0xff] }
  0x36   : > { %275 = vmatmul.f32.gmra.mxu1 %v197_v4  ;;  %398 = vmatpush.msrb.mxu0 %v347_v5  ;;  %v503_v4 = vld [vmem:[#allocation4 + $0x3c8] sm:$0xff]  ;;  %v502_v5 = vld [vmem:[#allocation4 + $0x3c0] sm:$0xff]  ;;  %v500_v13 = vld [vmem:[#allocation4 + $0x3b0] sm:$0xff] }
  0x37   : > { %440 = vmatpush.msrb.mxu1 %v431_v16  ;;  %384 = vmatpush.msra.mxu3 %v357_v20  ;;  %v499_v16 = vld [vmem:[#allocation4 + $0x3a8] sm:$0xff]  ;;  %v497_v20 = vld [vmem:[#allocation4 + $0x398] sm:$0xff] }
  0x38   : > { %399 = vmatpush.msrb.mxu0 %v346_v6  ;;  %512 = vmatpush.msrb.mxu2 %v507_v49  ;;  %v486_v6 = vld [vmem:[#allocation4 + $0x358] sm:$0xff] }
  0x39   : > { %441 = vmatpush.msrb.mxu1 %v430_v19  ;;  %385 = vmatpush.msra.mxu3 %v356_v23  ;;  %v570_v19 = vld [vmem:[#allocation4 + $0x458] sm:$0xff]  ;;  %v496_v23 = vld [vmem:[#allocation4 + $0x390] sm:$0xff] }
  0x3a   : > { %400 = vmatpush.msrb.mxu0 %v345_v7  ;;  %513 = vmatpush.msrb.mxu2 %v506_v54  ;;  %v574_v7 = vld [vmem:[#allocation4 + $0x478] sm:$0xff] }
  0x3b   : > { %442 = vmatpush.msrb.mxu1 %v429_v22  ;;  %386 = vmatpush.msra.mxu3 %v355_v26  ;;  %v569_v22 = vld [vmem:[#allocation4 + $0x450] sm:$0xff]  ;;  %v495_v26 = vld [vmem:[#allocation4 + $0x388] sm:$0xff] }
  0x3c   : > { %401 = vmatpush.msrb.mxu0 %v344_v12  ;;  %514 = vmatpush.msrb.mxu2 %v505_v2  ;;  %v572_v12 = vld [vmem:[#allocation4 + $0x468] sm:$0xff] }
  0x3d   : > { %443 = vmatpush.msrb.mxu1 %v428_v25  ;;  %533 = vmatpush.msrb.mxu3 %v490_v44  ;;  %v568_v25 = vld [vmem:[#allocation4 + $0x448] sm:$0xff] }
  0x3e   : > { %402 = vmatpush.msrb.mxu0 %v343_v15  ;;  %515 = vmatpush.msrb.mxu2 %v504_v3  ;;  %v571_v15 = vld [vmem:[#allocation4 + $0x460] sm:$0xff] }
  0x3f   : > { %444 = vmatpush.msrb.mxu1 %v427_v28  ;;  %534 = vmatpush.msrb.mxu3 %v489_v47  ;;  %v567_v28 = vld [vmem:[#allocation4 + $0x440] sm:$0xff] }
  0x40   : > { %403 = vmatpush.msrb.mxu0 %v342_v18  ;;  %516 = vmatpush.msrb.mxu2 %v503_v4  ;;  %v482_v18 = vld [vmem:[#allocation4 + $0x338] sm:$0xff] }
  0x41   : > { %445 = vmatpush.msrb.mxu1 %v426_v30  ;;  %535 = vmatpush.msrb.mxu3 %v488_v50  ;;  %v478_v30 = vld [vmem:[#allocation4 + $0x318] sm:$0xff] }
  0x42   : > { %404 = vmatpush.msrb.mxu0 %v341_v21  ;;  %517 = vmatpush.msrb.mxu2 %v502_v5  ;;  %v481_v21 = vld [vmem:[#allocation4 + $0x330] sm:$0xff] }
  0x43   : > { %446 = vmatpush.msrb.mxu1 %v425_v32  ;;  %536 = vmatpush.msrb.mxu3 %v487_v55  ;;  %v477_v32 = vld [vmem:[#allocation4 + $0x310] sm:$0xff] }
  0x44   : > { %405 = vmatpush.msrb.mxu0 %v340_v24  ;;  %518 = vmatpush.msrb.mxu2 %v501_v8  ;;  %v480_v24 = vld [vmem:[#allocation4 + $0x328] sm:$0xff] }
  0x45   : > { %447 = vmatpush.msrb.mxu1 %v424_v34  ;;  %537 = vmatpush.msrb.mxu3 %v486_v6  ;;  %v476_v34 = vld [vmem:[#allocation4 + $0x308] sm:$0xff] }
  0x46   : > { %406 = vmatpush.msrb.mxu0 %v339_v27  ;;  %519 = vmatpush.msrb.mxu2 %v500_v13  ;;  %v479_v27 = vld [vmem:[#allocation4 + $0x320] sm:$0xff] }
  0x47   : > { %448 = vmatpush.msrb.mxu1 %v423_v35  ;;  %538 = vmatpush.msrb.mxu3 %v485_v9  ;;  %v564_v35 = vld [vmem:[#allocation4 + $0x428] sm:$0xff] }
  0x48   : > { %407 = vmatpush.msrb.mxu0 %v338_v29  ;;  %520 = vmatpush.msrb.mxu2 %v499_v16  ;;  %v494_v29 = vld [vmem:[#allocation4 + $0x380] sm:$0xff] }
  0x49   : > { %449 = vmatpush.msrb.mxu1 %v422_v36  ;;  %539 = vmatpush.msrb.mxu3 %v484_v11  ;;  %v475_v36 = vld [vmem:[#allocation4 + $0x300] sm:$0xff] }
  0x4a   : > { %408 = vmatpush.msrb.mxu0 %v337_v31  ;;  %521 = vmatpush.msrb.mxu2 %v498_v17  ;;  %v566_v31 = vld [vmem:[#allocation4 + $0x438] sm:$0xff] }
  0x4b   : > { %450 = vmatpush.msrb.mxu1 %v421_v37  ;;  %540 = vmatpush.msrb.mxu3 %v483_v14  ;;  %v563_v37 = vld [vmem:[#allocation4 + $0x420] sm:$0xff] }
  0x4c   : > { %409 = vmatpush.msrb.mxu0 %v336_v33  ;;  %522 = vmatpush.msrb.mxu2 %v497_v20  ;;  %v565_v33 = vld [vmem:[#allocation4 + $0x430] sm:$0xff] }
  0x4d   : > { %451 = vmatpush.msrb.mxu1 %v420_v38  ;;  %541 = vmatpush.msrb.mxu3 %v482_v18  ;;  %v562_v38 = vld [vmem:[#allocation4 + $0x418] sm:$0xff] }
  0x4e   : > { %575 = vmatpush.msra.mxu0 %v574_v7  ;;  %523 = vmatpush.msrb.mxu2 %v496_v23 }
  0x4f   : > { %693 = vmatpush.msra.mxu1 %v574_v7  ;;  %542 = vmatpush.msrb.mxu3 %v481_v21 }
  0x50   : > { %576 = vmatpush.msra.mxu0 %v573_v10  ;;  %524 = vmatpush.msrb.mxu2 %v495_v26 }
  0x51   : > { %694 = vmatpush.msra.mxu1 %v573_v10  ;;  %543 = vmatpush.msrb.mxu3 %v480_v24 }
  0x52   : > { %577 = vmatpush.msra.mxu0 %v572_v12  ;;  %525 = vmatpush.msrb.mxu2 %v494_v29 }
  0x53   : > { %695 = vmatpush.msra.mxu1 %v572_v12  ;;  %544 = vmatpush.msrb.mxu3 %v479_v27 }
  0x54   : > { %578 = vmatpush.msra.mxu0 %v571_v15 }
  0x55   : > { %696 = vmatpush.msra.mxu1 %v571_v15  ;;  %545 = vmatpush.msrb.mxu3 %v478_v30 }
  0x56   : > { %579 = vmatpush.msra.mxu0 %v570_v19 }
  0x57   : > { %697 = vmatpush.msra.mxu1 %v570_v19  ;;  %546 = vmatpush.msrb.mxu3 %v477_v32 }
  0x58   : > { %580 = vmatpush.msra.mxu0 %v569_v22 }
  0x59   : > { %698 = vmatpush.msra.mxu1 %v569_v22  ;;  %547 = vmatpush.msrb.mxu3 %v476_v34 }
  0x5a   : > { %581 = vmatpush.msra.mxu0 %v568_v25 }
  0x5b   : > { %699 = vmatpush.msra.mxu1 %v568_v25  ;;  %548 = vmatpush.msrb.mxu3 %v475_v36 }
  0x5c   : > { %582 = vmatpush.msra.mxu0 %v567_v28 }
  0x5d   : > { %700 = vmatpush.msra.mxu1 %v567_v28 }
  0x5e   : > { %583 = vmatpush.msra.mxu0 %v566_v31 }
  0x5f   : > { %701 = vmatpush.msra.mxu1 %v566_v31 }
  0x60   : > { %584 = vmatpush.msra.mxu0 %v565_v33 }
  0x61   : > { %702 = vmatpush.msra.mxu1 %v565_v33 }
  0x62   : > { %585 = vmatpush.msra.mxu0 %v564_v35 }
  0x63   : > { %703 = vmatpush.msra.mxu1 %v564_v35 }
  0x64   : > { %586 = vmatpush.msra.mxu0 %v563_v37 }
  0x65   : > { %704 = vmatpush.msra.mxu1 %v563_v37 }
  0x66   : > { %587 = vmatpush.msra.mxu0 %v562_v38 }
  0x67   : > { %705 = vmatpush.msra.mxu1 %v562_v38 }
  0xaa   : > { %v250_v39 = vpop.f32.mrf.mxu0 }
  0xab   : > { %v273_v40 = vpop.f32.mrf.mxu1 }
  0xac   : > { %v274_v41 = vadd.f32 %v273_v40, %v250_v39  ;;  %v561_v39 = vld [vmem:[#allocation4 + $0x410] sm:$0xff]  ;;  %v560_v40 = vld [vmem:[#allocation4 + $0x408] sm:$0xff] }
  0xad   : > { %588 = vmatpush.msra.mxu0 %v561_v39  ;;  %706 = vmatpush.msra.mxu1 %v561_v39 }
  0xaf   : > { %v315_v46 = vpop.f32.mrf.mxu2  ;;  %589 = vmatpush.msra.mxu0 %v560_v40  ;;  %707 = vmatpush.msra.mxu1 %v560_v40 }
  0xb0   : > { %v321_v48 = vadd.f32 %v315_v46, %v274_v41  ;;  %v559_v41 = vld [vmem:[#allocation4 + $0x400] sm:$0xff] }
  0xb1   : > { %590 = vmatpush.msra.mxu0 %v559_v41  ;;  %708 = vmatpush.msra.mxu1 %v559_v41 }
  0xb2   : > { %v327_v51 = vadd.f32 %v731_v42, %v321_v48  ;;  %v253_v52 = vpop.f32.mrf.mxu0 }
  0xb3   : > { %v276_v53 = vpop.f32.mrf.mxu1 }
  0xb4   : > { %v329_v56 = vmax.f32 %v327_v51, 0.0  ;;  %v277_v57 = vadd.f32 %v276_v53, %v253_v52 }
  0xb6   : > { %331 = vst [vmem:[#allocation3 + $0x1] sm:$0xff] %v329_v56  ;;  %387 = vmatmul.f32.vlgmr.msra.gmra.mxu3 %v329_v56 }
  0xb7   : > { %v318_v58 = vpop.f32.mrf.mxu2 }
  0xb8   : > { %v322_v59 = vadd.f32 %v318_v58, %v277_v57 }
  0xba   : > { %v328_v60 = vadd.f32 %v731_v42, %v322_v59 }
  0xbc   : > { %v330_v61 = vmax.f32 %v328_v60, 0.0 }
  0xbd   : > { %v333_v62 = vld [vmem:[#allocation3] sm:$0xff] }
  0xbe   : > { %332 = vst [vmem:[#allocation3 + $0x9] sm:$0xff] %v330_v61  ;;  %410 = vmatmul.f32.vlgmr.msrb.gmra.mxu0 %v333_v62  ;;  %390 = vmatmul.f32.gmra.mxu3 %v330_v61 }
  0xc5   : > { %v334_v63 = vld [vmem:[#allocation3 + $0x8] sm:$0xff] }
  0xc6   : > { %v417_v0 = vld [vmem:[#allocation3 + $0x2] sm:$0xff]  ;;  %413 = vmatmul.f32.gmra.mxu0 %v334_v63  ;;  %v418_v1 = vld [vmem:[#allocation3 + $0xa] sm:$0xff] }
  0xc7   : > { %452 = vmatmul.f32.vlgmr.msrb.gmra.mxu1 %v417_v0  ;;  %v733_v0 = vld [vmem:[%s853_s2 + $0x2] ss:$0 sm:$0xff] }
  0xcf   : > { %455 = vmatmul.f32.gmra.mxu1 %v418_v1 }
 0x139   : > { %v388_v43 = vpop.f32.mrf.mxu3 }
 0x13b   : > { %v411_v42 = vpop.f32.mrf.mxu0 }
 0x13c   : > { %v412_v44 = vadd.f32 %v411_v42, %v388_v43 }
 0x141   : > { %v391_v51 = vpop.f32.mrf.mxu3 }
 0x143   : > { %v414_v49 = vpop.f32.mrf.mxu0 }
 0x144   : > { %v453_v46 = vpop.f32.mrf.mxu1  ;;  %v415_v52 = vadd.f32 %v414_v49, %v391_v51 }
 0x145   : > { %v459_v47 = vadd.f32 %v453_v46, %v412_v44 }
 0x147   : > { %v466_v48 = vadd.f32 %v732_v45, %v459_v47 }
 0x149   : > { %v468_v50 = vmax.f32 %v466_v48, 0.0 }
 0x14b   : > { %470 = vst [vmem:[#allocation2 + $0x1] sm:$0xff] %v468_v50  ;;  %526 = vmatmul.f32.vlgmr.msrb.gmra.mxu2 %v468_v50 }
 0x14c   : > { %v456_v53 = vpop.f32.mrf.mxu1 }
 0x14d   : > { %v460_v54 = vadd.f32 %v456_v53, %v415_v52 }
 0x14f   : > { %v467_v55 = vadd.f32 %v732_v45, %v460_v54 }
 0x151   : > { %v469_v56 = vmax.f32 %v467_v55, 0.0 }
 0x152   : > { %v472_v57 = vld [vmem:[#allocation2] sm:$0xff] }
 0x153   : > { %471 = vst [vmem:[#allocation2 + $0x9] sm:$0xff] %v469_v56  ;;  %549 = vmatmul.f32.vlgmr.msrb.gmra.mxu3 %v472_v57  ;;  %529 = vmatmul.f32.gmra.mxu2 %v469_v56 }
 0x15a   : > { %v473_v58 = vld [vmem:[#allocation2 + $0x8] sm:$0xff] }
 0x15b   : > { %v556_v59 = vld [vmem:[#allocation2 + $0x2] sm:$0xff]  ;;  %v557_v60 = vld [vmem:[#allocation2 + $0xa] sm:$0xff]  ;;  %552 = vmatmul.f32.gmra.mxu3 %v473_v58 }
 0x15c   : > { %591 = vmatmul.f32.vlgmr.msra.gmra.mxu0 %v556_v59  ;;  %594 = vmatmul.f32.vlgmr.msra.gmra.mxu1 %v557_v60 }
 0x1ce   : > { %v527_v61 = vpop.f32.mrf.mxu2 }
 0x1d6   : > { %v550_v62 = vpop.f32.mrf.mxu3  ;;  %v530_v4 = vpop.f32.mrf.mxu2 }
 0x1d7   : > { %v551_v63 = vadd.f32 %v550_v62, %v527_v61 }
 0x1d9   : > { %v592_v1 = vpop.f32.mrf.mxu0  ;;  %v595_v7 = vpop.f32.mrf.mxu1 }
 0x1da   : > { %v598_v2 = vadd.f32 %v592_v1, %v551_v63 }
 0x1dc   : > { %v605_v3 = vadd.f32 %v733_v0, %v598_v2 }
 0x1de   : > { %607 = vst [vmem:[%s187_s6] sm:$0xff] %v605_v3  ;;  %v553_v5 = vpop.f32.mrf.mxu3 }
 0x1df   : > { %v554_v6 = vadd.f32 %v553_v5, %v530_v4 }
 0x1e1   : > { %v599_v8 = vadd.f32 %v595_v7, %v554_v6 }
 0x1e3   : > { %v606_v9 = vadd.f32 %v733_v0, %v599_v8 }
 0x1e5   : > { %608 = vst [vmem:[%s187_s6 + $0x8] sm:$0xff] %v606_v9 }
 0x1e6 PF: > { %s14_s12 = sadd.s32 1, %s774_s12  }
 0x1e7   : > { %p11_p7 = scmp.ge.s32.totalorder %s14_s12, 4  }
 0x1e9   :  { %13 = sbr.rel (!%p11_p7) target bundleno = 1 (0x1), region = 77 }
 0x1ee   :  { %630 = vsyncpa [#allocation5], 1 }
 0x1ef   :  { %632 = vsyncpa [#allocation5 + $0x1], 1 }

</bundles_post_ra>
